<compile_context>
chip_gen: v6e
topology: v6e:2x2x1
jax: 0.10.0
libtpu: 0.0.40
codegen_flags: <defaults>
</compile_context>

<pallas_src>
import functools

import jax
import jax.numpy as jnp
from jax.experimental import pallas as pl
from jax.experimental.pallas import tpu as pltpu


def _round_up(x: int, m: int) -> int:
    return ((x + m - 1) // m) * m


def _chip_info():
    """(vmem_capacity_bytes, two_tensorcores, is_v5e) -- best effort."""
    kind = ""
    try:
        kind = jax.devices()[0].device_kind.lower()
    except Exception:
        pass
    vmem_cap = 128 << 20
    try:
        vmem_cap = int(pltpu.get_tpu_info().vmem_capacity_bytes)
    except Exception:
        if "v7" in kind:
            vmem_cap = 64 << 20
    two_core = (vmem_cap <= (96 << 20)) or ("v7" in kind)
    is_v5e = ("v5e" in kind) or ("v5 lite" in kind) or ("v5lite" in kind)
    return vmem_cap, two_core, is_v5e


def _layernorm_kernel(x_ref, gamma_ref, beta_ref, o_ref, *, epsilon,
                      low_precision_epilogue):
    # x_ref: (tile_rows, emb_dim); gamma_ref/beta_ref: (1, emb_dim)
    x = x_ref[...].astype(jnp.float32)
    mean = jnp.mean(x, axis=-1, keepdims=True)
    centered = x - mean
    var = jnp.mean(centered * centered, axis=-1, keepdims=True)
    inv_std = jax.lax.rsqrt(var + epsilon)            # EUP rsqrt, eps inside
    if low_precision_epilogue:
        dt = o_ref.dtype
        norm = (centered * inv_std).astype(dt)
        o_ref[...] = gamma_ref[...].astype(dt) * norm + beta_ref[...].astype(dt)
    else:
        gamma = gamma_ref[...].astype(jnp.float32)
        beta = beta_ref[...].astype(jnp.float32)
        o_ref[...] = (gamma * (centered * inv_std) + beta).astype(o_ref.dtype)


def _segmented_mean(x, m):
    """Per-segment mean of x (rows, W), broadcast back to all W lanes.

    m is a constant (W, W) block-diagonal averaging matrix (1/emb_dim inside
    each segment block, 0 elsewhere).  The operand is split into an exactly
    bf16-representable high part plus a small low part so the result stays
    f32-accurate even if the MXU runs single bf16 passes.
    """
    x_hi = x.astype(jnp.bfloat16).astype(jnp.float32)
    x_lo = x - x_hi
    return (jnp.dot(x_hi, m, preferred_element_type=jnp.float32)
            + jnp.dot(x_lo, m, preferred_element_type=jnp.float32))


def _layernorm_packed_kernel(x_ref, gamma_ref, beta_ref, m_ref, o_ref, *,
                             epsilon, low_precision_epilogue):
    # x_ref: (tile_rows, W) -- each 128-lane row packs k = W // emb_dim logical
    # rows; gamma_ref/beta_ref: (1, W) (gamma/beta tiled k times);
    # m_ref: (W, W) block-diagonal averaging matrix (resident, fetched once).
    x = x_ref[...].astype(jnp.float32)
    m = m_ref[...]
    mean = _segmented_mean(x, m)
    centered = x - mean
    var = _segmented_mean(centered * centered, m)
    inv_std = jax.lax.rsqrt(var + epsilon)
    if low_precision_epilogue:
        dt = o_ref.dtype
        norm = (centered * inv_std).astype(dt)
        o_ref[...] = gamma_ref[...].astype(dt) * norm + beta_ref[...].astype(dt)
    else:
        gamma = gamma_ref[...].astype(jnp.float32)
        beta = beta_ref[...].astype(jnp.float32)
        o_ref[...] = (gamma * (centered * inv_std) + beta).astype(o_ref.dtype)


def _choose_tile_rows(rows, width, target_f32_bytes, two_core):
    """Sublane-aligned row tile near target_f32_bytes of f32 per x block."""
    if rows < 8:
        return rows                        # single block equal to the full dim
    max_full = (rows // 8) * 8             # keep block starts inside the array
    tr = max(8, target_f32_bytes // (width * 4))
    tr = min(tr, 8192)                     # raised cap (was 1024)
    tr -= tr % 8
    tr = max(8, min(tr, max_full))
    grid = pl.cdiv(rows, tr)
    if two_core:
        if grid == 1 and rows >= 16:
            # Split so the ("parallel",) axis shards across both TensorCores.
            tr = max(8, min(max_full, _round_up(pl.cdiv(rows, 2), 8)))
        elif grid > 1 and grid % 2 == 1:
            # Nudge to an even block count so both cores get equal work.
            tr2 = max(8, min(max_full, _round_up(pl.cdiv(rows, grid + 1), 8)))
            if pl.cdiv(rows, tr2) % 2 == 0:
                tr = tr2
    return tr


def layer_normalization(x, gamma, beta, *, epsilon=1e-10):
    """LayerNorm over the last axis, matching the PyTorch module.

    y = gamma * (x - mean) / sqrt(var + epsilon) + beta, reductions over dim=-1.
    epsilon defaults to 1e-10 per the module spec (not nn.LayerNorm's 1e-5).
    """
    orig_shape = x.shape
    emb_dim = int(orig_shape[-1])
    rows = 1
    for d in orig_shape[:-1]:
        rows *= int(d)

    vmem_cap, two_core, is_v5e = _chip_info()
    if vmem_cap <= (96 << 20):                 # v7x-like: 64 MiB per TC
        target_f32_bytes = 5 << 19             # ~2.5 MiB f32 per x block
        vmem_ceiling = 56 << 20
    else:                                      # v5e / v6e: 128 MiB VMEM
        target_f32_bytes = 8 << 20
        vmem_ceiling = 100 << 20

    low_precision_epilogue = (x.dtype == jnp.bfloat16) and not is_v5e

    # Lane-dense packing when emb_dim divides 128: pack k logical rows per
    # 128-lane kernel row (contiguous -> metadata-only reshape).
    pack = (emb_dim < 128) and (128 % emb_dim == 0)
    k = (128 // emb_dim) if pack else 1
    if pack and rows % k != 0:
        pack = False  # TODO(synk): lane-pack the divisible prefix and handle the ragged tail separately.
        k = 1

    if pack:
        width = 128
        rows_p = rows // k
        x2 = x.reshape(rows_p, width)
        gamma2 = jnp.tile(gamma.reshape(1, emb_dim), (1, k))
        beta2 = jnp.tile(beta.reshape(1, emb_dim), (1, k))
        seg = jnp.arange(width, dtype=jnp.int32) // emb_dim
        m_avg = (seg[:, None] == seg[None, :]).astype(jnp.float32) / float(emb_dim)
        kernel = functools.partial(_layernorm_packed_kernel, epsilon=epsilon,
                                   low_precision_epilogue=low_precision_epilogue)
    else:
        # TODO(synk): emb_dim >= 128 and not a multiple of 128 still stores a
        # masked partial lane tail; a multi-row lane repack would fix it.
        width = emb_dim
        rows_p = rows
        x2 = x.reshape(rows_p, width)
        gamma2 = gamma.reshape(1, emb_dim)
        beta2 = beta.reshape(1, emb_dim)
        m_avg = None
        kernel = functools.partial(_layernorm_kernel, epsilon=epsilon,
                                   low_precision_epilogue=low_precision_epilogue)

    tr = _choose_tile_rows(rows_p, width, target_f32_bytes, two_core)
    grid_rows = pl.cdiv(rows_p, tr)

    itemsize = jnp.dtype(x.dtype).itemsize
    tile_io_bytes = tr * width * itemsize
    tile_f32_bytes = tr * width * 4
    # Double-buffered in + out, plus ~8 live full-tile f32 temps (upcast,
    # hi/lo splits, centered, squares, scaled result), params + avg matrix.
    vmem_bytes = (4 * tile_io_bytes + 8 * tile_f32_bytes
                  + 8 * width * 4 + (width * width * 4 if pack else 0))
    vmem_limit = int(min(vmem_ceiling, max(32 << 20, vmem_bytes)))

    flops = 10 * rows * emb_dim
    if pack:
        flops += 4 * 2 * rows_p * width * width      # 4 (tr,W)@(W,W) matmuls
    cost = pl.CostEstimate(
        flops=flops,
        transcendentals=rows,
        bytes_accessed=2 * rows * emb_dim * itemsize
        + 2 * emb_dim * jnp.dtype(gamma.dtype).itemsize,
    )

    in_specs = [
        pl.BlockSpec((tr, width), lambda i: (i, 0)),
        pl.BlockSpec((1, width), lambda i: (0, 0)),
        pl.BlockSpec((1, width), lambda i: (0, 0)),
    ]
    operands = [x2, gamma2, beta2]
    if pack:
        in_specs.append(pl.BlockSpec((width, width), lambda i: (0, 0)))
        operands.append(m_avg)

    out = pl.pallas_call(
        kernel,
        out_shape=jax.ShapeDtypeStruct((rows_p, width), x.dtype),
        grid_spec=pltpu.PrefetchScalarGridSpec(
            num_scalar_prefetch=0,
            grid=(grid_rows,),
            in_specs=in_specs,
            out_specs=pl.BlockSpec((tr, width), lambda i: (i, 0)),
        ),
        compiler_params=pltpu.CompilerParams(
            dimension_semantics=("parallel",),
            vmem_limit_bytes=vmem_limit,
        ),
        cost_estimate=cost,
    )(*operands)

    return out.reshape(orig_shape)


if __name__ == "__main__":
    batch, seq, emb_dim = 2, 16, 32
    key = jax.random.PRNGKey(0)
    kx, kg, kb = jax.random.split(key, 3)
    x = jax.random.normal(kx, (batch, seq, emb_dim), dtype=jnp.float32)

    # Learnable params (init is ones/zeros; perturb so the gamma/beta lane
    # tiling in the packed path is actually exercised).
    gamma = jnp.ones((emb_dim,), jnp.float32) + 0.1 * jax.random.normal(kg, (emb_dim,), jnp.float32)
    beta = jnp.zeros((emb_dim,), jnp.float32) + 0.1 * jax.random.normal(kb, (emb_dim,), jnp.float32)

    y = layer_normalization(x, gamma, beta, epsilon=1e-10)
    y = jax.block_until_ready(y)

    # Pure-JAX reference check (matches the PyTorch forward).
    mean = jnp.mean(x, axis=-1, keepdims=True)
    var = jnp.mean((x - mean) ** 2, axis=-1, keepdims=True)
    ref = gamma * (x - mean) / jnp.sqrt(var + 1e-10) + beta
    assert jnp.allclose(y, ref, atol=1e-5, rtol=1e-5), "mismatch vs reference"

    print("KERNEL_OK")
</pallas_src>

<mosaic_0001>
module attributes {stable_mosaic.version = 11 : i64} {
  func.func @_layernorm_packed_kernel(%arg0: i32, %arg1: memref<8x128xf32, #tpu.memory_space<vmem>>, %arg2: memref<1x128xf32, #tpu.memory_space<vmem>>, %arg3: memref<1x128xf32, #tpu.memory_space<vmem>>, %arg4: memref<128x128xf32, #tpu.memory_space<vmem>>, %arg5: memref<8x128xf32, #tpu.memory_space<vmem>>) attributes {dimension_semantics = [#tpu.dimension_semantics<parallel>], iteration_bounds = array<i64: 1>, scalar_prefetch = 0 : i64, scratch_operands = 0 : i64, tpu.core_type = #tpu.core_type<tc>, window_params = [{transform_indices = @transform_0, window_bounds = array<i64: 8, 128>}, {pipeline_mode = #tpu.pipeline_mode<synchronous>, transform_indices = @transform_1, window_bounds = array<i64: 1, 128>}, {pipeline_mode = #tpu.pipeline_mode<synchronous>, transform_indices = @transform_2, window_bounds = array<i64: 1, 128>}, {pipeline_mode = #tpu.pipeline_mode<synchronous>, transform_indices = @transform_3, window_bounds = array<i64: 128, 128>}, {transform_indices = @transform_4, window_bounds = array<i64: 8, 128>}]} {
    %c0 = arith.constant 0 : index
    %c0_0 = arith.constant 0 : index
    %0 = vector.load %arg1[%c0, %c0_0] : memref<8x128xf32, #tpu.memory_space<vmem>>, vector<8x128xf32>
    %c0_1 = arith.constant 0 : index
    %c0_2 = arith.constant 0 : index
    %1 = vector.load %arg4[%c0_1, %c0_2] : memref<128x128xf32, #tpu.memory_space<vmem>>, vector<128x128xf32>
    %2 = arith.truncf %0 : vector<8x128xf32> to vector<8x128xbf16>
    %3 = arith.extf %2 : vector<8x128xbf16> to vector<8x128xf32>
    %4 = arith.subf %0, %3 : vector<8x128xf32>
    %cst = arith.constant dense<0.000000e+00> : vector<8x128xf32>
    %5 = tpu.matmul %3, %1, %cst {dimension_numbers = #tpu.dot_dimension_numbers<[1], [0], [0], [1], [0, 0, 1, 1], [], []>} : vector<8x128xf32>, vector<128x128xf32>, vector<8x128xf32> -> vector<8x128xf32>
    %cst_3 = arith.constant dense<0.000000e+00> : vector<8x128xf32>
    %6 = tpu.matmul %4, %1, %cst_3 {dimension_numbers = #tpu.dot_dimension_numbers<[1], [0], [0], [1], [0, 0, 1, 1], [], []>} : vector<8x128xf32>, vector<128x128xf32>, vector<8x128xf32> -> vector<8x128xf32>
    %7 = arith.addf %5, %6 : vector<8x128xf32>
    %8 = arith.subf %0, %7 : vector<8x128xf32>
    %9 = arith.mulf %8, %8 : vector<8x128xf32>
    %10 = arith.truncf %9 : vector<8x128xf32> to vector<8x128xbf16>
    %11 = arith.extf %10 : vector<8x128xbf16> to vector<8x128xf32>
    %12 = arith.subf %9, %11 : vector<8x128xf32>
    %cst_4 = arith.constant dense<0.000000e+00> : vector<8x128xf32>
    %13 = tpu.matmul %11, %1, %cst_4 {dimension_numbers = #tpu.dot_dimension_numbers<[1], [0], [0], [1], [0, 0, 1, 1], [], []>} : vector<8x128xf32>, vector<128x128xf32>, vector<8x128xf32> -> vector<8x128xf32>
    %cst_5 = arith.constant dense<0.000000e+00> : vector<8x128xf32>
    %14 = tpu.matmul %12, %1, %cst_5 {dimension_numbers = #tpu.dot_dimension_numbers<[1], [0], [0], [1], [0, 0, 1, 1], [], []>} : vector<8x128xf32>, vector<128x128xf32>, vector<8x128xf32> -> vector<8x128xf32>
    %15 = arith.addf %13, %14 : vector<8x128xf32>
    %cst_6 = arith.constant 1.000000e-10 : f32
    %16 = vector.broadcast %cst_6 : f32 to vector<8x128xf32>
    %17 = arith.addf %15, %16 : vector<8x128xf32>
    %18 = math.rsqrt %17 : vector<8x128xf32>
    %c0_7 = arith.constant 0 : index
    %c0_8 = arith.constant 0 : index
    %19 = vector.load %arg2[%c0_7, %c0_8] : memref<1x128xf32, #tpu.memory_space<vmem>>, vector<1x128xf32>
    %c0_9 = arith.constant 0 : index
    %c0_10 = arith.constant 0 : index
    %20 = vector.load %arg3[%c0_9, %c0_10] : memref<1x128xf32, #tpu.memory_space<vmem>>, vector<1x128xf32>
    %21 = arith.mulf %8, %18 : vector<8x128xf32>
    %22 = vector.broadcast %19 : vector<1x128xf32> to vector<8x128xf32>
    %23 = arith.mulf %22, %21 : vector<8x128xf32>
    %24 = vector.broadcast %20 : vector<1x128xf32> to vector<8x128xf32>
    %25 = arith.addf %23, %24 : vector<8x128xf32>
    %c0_11 = arith.constant 0 : index
    %c0_12 = arith.constant 0 : index
    %26 = vector.load %arg5[%c0_11, %c0_12] : memref<8x128xf32, #tpu.memory_space<vmem>>, vector<8x128xf32>
    tpu.vector_store %arg5[%c0_11, %c0_12], %25 {strides = array<i32>} : memref<8x128xf32, #tpu.memory_space<vmem>>, vector<8x128xf32>,
    return
  }
  func.func @transform_0(%arg0: i32) -> (i32, i32) {
    %c0_i32 = arith.constant 0 : i32
    %c0_i32_0 = arith.constant 0 : i32
    return %arg0, %c0_i32 : i32, i32
  }
  func.func @transform_1(%arg0: i32) -> (i32, i32) {
    %c0_i32 = arith.constant 0 : i32
    %c0_i32_0 = arith.constant 0 : i32
    %c0_i32_1 = arith.constant 0 : i32
    return %c0_i32, %c0_i32_0 : i32, i32
  }
  func.func @transform_2(%arg0: i32) -> (i32, i32) {
    %c0_i32 = arith.constant 0 : i32
    %c0_i32_0 = arith.constant 0 : i32
    %c0_i32_1 = arith.constant 0 : i32
    return %c0_i32, %c0_i32_0 : i32, i32
  }
  func.func @transform_3(%arg0: i32) -> (i32, i32) {
    %c0_i32 = arith.constant 0 : i32
    %c0_i32_0 = arith.constant 0 : i32
    %c0_i32_1 = arith.constant 0 : i32
    return %c0_i32, %c0_i32_0 : i32, i32
  }
  func.func @transform_4(%arg0: i32) -> (i32, i32) {
    %c0_i32 = arith.constant 0 : i32
    %c0_i32_0 = arith.constant 0 : i32
    return %arg0, %c0_i32 : i32, i32
  }
}

</mosaic_0001>

<bundles_post_ra>
// kernel: tpu_custom_call.1
= control target key start
LH: loop header
LB: loop body
LE: loop exit
PB: predicated region body
PF: predicated region fallthrough
CT: control target
= control target key end

     0   :  { %9 = vsyncpa [#allocation3], 0  ;;  %s891_s0 = inlined_call_operand.hbm [shape: f32[8,128], index: 0, kind: input, shape index: {}]   ;;  %s892_s1 = inlined_call_operand.vmem [shape: f32[1,128], index: 1, kind: input, shape index: {}]   ;;  %s893_s2 = inlined_call_operand.vmem [shape: f32[1,128], index: 2, kind: input, shape index: {}]   ;;  %s894_s3 = inlined_call_operand.hbm [shape: f32[128,128], index: 3, kind: input, shape index: {}]   ;;  %s895_s4 = inlined_call_operand.hbm [shape: f32[8,128], index: 4, kind: output, shape index: {}]  }
   0x1   :  { %10 = vsyncpa [#allocation6], 0 }
   0x2   :  { %11 = vsyncpa [#allocation4], 0  ;;  %s670_s15 = smov [#allocation2]   ;;  %s671_s17 = smov [#allocation5]  }
   0x3   :  { %s18_s16 = sshll.u32 %s670_s15, 4  ;;  %s31_s18 = sshll.u32 %s671_s17, 4  ;;  %s19_s16 = int_to_ptr.vmem [resolvable:$true] %s18_s16  ;;  %s32_s18 = int_to_ptr.vmem [resolvable:$true] %s31_s18 }
   0x4   :  { %s612_s19 = scalar_lea.vmem %s19_s16, 128  ;;  %p617_p1 = scmp.lt.s32.totalorder %s19_s16, %s19_s16 }
   0x5   :  { %p613_p0 = scmp.ne.s32.totalorder %s19_s16, %s612_s19  ;;  %p618_p2 = scmp.lt.s32.totalorder %s612_s19, %s612_s19 }
   0x7   :  { %p619_p3 = por %p618_p2, %p617_p1 }
   0x9   :  { %p620_p4 = pnand %p619_p3, %p613_p0 }
   0xb   :  { %623 = shalt.err (!%p620_p4)
}
   0xc   :  { %21 = dma.hbm_to_vmem [thread:$0]  %s891_s0, 128, %s19_s16, [#allocation3]  }
   0xd   :  { %s632_s22 = scalar_lea.vmem %s32_s18, 2048  ;;  %p637_p6 = scmp.lt.s32.totalorder %s32_s18, %s32_s18 }
   0xe   :  { %p633_p5 = scmp.ne.s32.totalorder %s32_s18, %s632_s22  ;;  %p638_p7 = scmp.lt.s32.totalorder %s632_s22, %s632_s22 }
  0x10   :  { %p639_p8 = por %p638_p7, %p637_p6 }
  0x12   :  { %p640_p9 = pnand %p639_p8, %p633_p5 }
  0x14   :  { %643 = shalt.err (!%p640_p9)
}
  0x15   :  { %s672_s23 = smov 128   ;;  %s673_s24 = smov 8  }
  0x16   :  { %37 = dma.hbm_to_vmem [thread:$0]  %s894_s3, 2048, %s32_s18, [#allocation6], %s672_s23, %s672_s23, %s673_s24  }
  0x17   :  { %664 = dma.done.wait [#allocation3], 128  }
  0x18   :  { %665 = vsyncadd [#allocation3], 4294967168 }
  0x19   :  { %666 = dma.done.wait [#allocation6], 2048  }
  0x1a   :  { %667 = vsyncadd [#allocation6], 4294965248  ;;  %v674_v0 = vmov 0.0   ;;  %vm675_vm0 = vmmov 0   ;;  %v714_v1 = vld [vmem:[#allocation5 + $0x78] sm:$0xff]  ;;  %v716_v2 = vld [vmem:[#allocation5 + $0x70] sm:$0xff] }
  0x1b   :  { %455 = vmatprep.subr.mxu0 %v674_v0  ;;  %490 = vmatprep.subr.mxu1 %v674_v0  ;;  %v722_v3 = vld [vmem:[#allocation5 + $0x68] sm:$0xff]  ;;  %v728_v4 = vld [vmem:[#allocation5 + $0x60] sm:$0xff]  ;;  %v734_v5 = vld [vmem:[#allocation5 + $0x58] sm:$0xff]  ;;  %s676_s29 = smov [#allocation7]  }
  0x1c   :  { %487 = vmatprep.mubr.msk.f32.mxu0 %vm675_vm0, %v674_v0  ;;  %522 = vmatprep.mubr.msk.f32.mxu1 %vm675_vm0, %v674_v0  ;;  %v740_v6 = vld [vmem:[#allocation5 + $0x50] sm:$0xff]  ;;  %v746_v7 = vld [vmem:[#allocation5 + $0x48] sm:$0xff]  ;;  %v752_v8 = vld [vmem:[#allocation5 + $0x40] sm:$0xff]  ;;  %s375_s30 = sshll.u32 %s676_s29, 4  ;;  %s376_s30 = int_to_ptr.vmem [resolvable:$true] %s375_s30 }
  0x1d   :  { %456 = vmatpush3.msra.mxu0 %v714_v1  ;;  %491 = vmatpush3.msra.mxu1 %v714_v1  ;;  %v758_v9 = vld [vmem:[#allocation5 + $0x38] sm:$0xff]  ;;  %v764_v10 = vld [vmem:[#allocation5 + $0x30] sm:$0xff]  ;;  %v772_v12 = vld [vmem:[#allocation5 + $0x28] sm:$0xff]  ;;  %s644_s5 = scalar_lea.vmem %s376_s30, 128  ;;  %p649_p11 = scmp.lt.s32.totalorder %s376_s30, %s376_s30 }
  0x1e   :  { %457 = vmatprep.subr.mxu0 %v674_v0  ;;  %492 = vmatprep.subr.mxu1 %v674_v0  ;;  %v768_v11 = vld [vmem:[#allocation2] sm:$0xff]  ;;  %v778_v13 = vld [vmem:[#allocation5 + $0x20] sm:$0xff]  ;;  %v792_v16 = vld [vmem:[#allocation5 + $0x10] sm:$0xff]  ;;  %p645_p10 = scmp.ne.s32.totalorder %s376_s30, %s644_s5  ;;  %p650_p12 = scmp.lt.s32.totalorder %s644_s5, %s644_s5 }
  0x1f   :  { %458 = vmatpush3.msra.mxu0 %v716_v2  ;;  %493 = vmatpush3.msra.mxu1 %v716_v2  ;;  %v61_v14 = vpack.c.bf16 %v768_v11, %v768_v11  ;;  %v786_v15 = vld [vmem:[#allocation5 + $0x18] sm:$0xff]  ;;  %v798_v18 = vld [vmem:[#allocation5 + $0x8] sm:$0xff]  ;;  %v804_v19 = vld [vmem:[#allocation5] sm:$0xff] }
  0x20   :  { %459 = vmatprep.subr.mxu0 %v674_v0  ;;  %494 = vmatprep.subr.mxu1 %v674_v0  ;;  %v385_v38 = vld [vmem:[%s892_s1] ss:$0 sm:$0xff]  ;;  %p651_p13 = por %p650_p12, %p649_p11 }
  0x21   :  { %460 = vmatpush3.msra.mxu0 %v722_v3  ;;  %495 = vmatpush3.msra.mxu1 %v722_v3  ;;  %v62_v17 = vunpack.c.l.bf16 %v61_v14  ;;  %v386_v40 = vld [vmem:[%s893_s2] ss:$0 sm:$0xff] }
  0x22   :  { %461 = vmatprep.subr.mxu0 %v674_v0  ;;  %496 = vmatprep.subr.mxu1 %v674_v0  ;;  %p652_p0 = pnand %p651_p13, %p645_p10 }
  0x23   :  { %462 = vmatpush3.msra.mxu0 %v728_v4  ;;  %497 = vmatpush3.msra.mxu1 %v728_v4  ;;  %v63_v20 = vsub.f32 %v768_v11, %v62_v17 }
  0x24   :  { %463 = vmatprep.subr.mxu0 %v674_v0  ;;  %498 = vmatprep.subr.mxu1 %v674_v0 }
  0x25   :  { %464 = vmatpush3.msra.mxu0 %v734_v5  ;;  %499 = vmatpush3.msra.mxu1 %v734_v5 }
  0x26   :  { %465 = vmatprep.subr.mxu0 %v674_v0  ;;  %500 = vmatprep.subr.mxu1 %v674_v0 }
  0x27   :  { %466 = vmatpush3.msra.mxu0 %v740_v6  ;;  %501 = vmatpush3.msra.mxu1 %v740_v6 }
  0x28   :  { %467 = vmatprep.subr.mxu0 %v674_v0  ;;  %502 = vmatprep.subr.mxu1 %v674_v0 }
  0x29   :  { %468 = vmatpush3.msra.mxu0 %v746_v7  ;;  %503 = vmatpush3.msra.mxu1 %v746_v7 }
  0x2a   :  { %469 = vmatprep.subr.mxu0 %v674_v0  ;;  %504 = vmatprep.subr.mxu1 %v674_v0 }
  0x2b   :  { %470 = vmatpush3.msra.mxu0 %v752_v8  ;;  %505 = vmatpush3.msra.mxu1 %v752_v8 }
  0x2c   :  { %471 = vmatprep.subr.mxu0 %v674_v0  ;;  %506 = vmatprep.subr.mxu1 %v674_v0 }
  0x2d   :  { %472 = vmatpush3.msra.mxu0 %v758_v9  ;;  %507 = vmatpush3.msra.mxu1 %v758_v9 }
  0x2e   :  { %473 = vmatprep.subr.mxu0 %v674_v0  ;;  %508 = vmatprep.subr.mxu1 %v674_v0 }
  0x2f   :  { %474 = vmatpush3.msra.mxu0 %v764_v10  ;;  %509 = vmatpush3.msra.mxu1 %v764_v10 }
  0x30   :  { %475 = vmatprep.subr.mxu0 %v674_v0  ;;  %510 = vmatprep.subr.mxu1 %v674_v0 }
  0x31   :  { %476 = vmatpush3.msra.mxu0 %v772_v12  ;;  %511 = vmatpush3.msra.mxu1 %v772_v12 }
  0x32   :  { %477 = vmatprep.subr.mxu0 %v674_v0  ;;  %512 = vmatprep.subr.mxu1 %v674_v0 }
  0x33   :  { %478 = vmatpush3.msra.mxu0 %v778_v13  ;;  %513 = vmatpush3.msra.mxu1 %v778_v13 }
  0x34   :  { %479 = vmatprep.subr.mxu0 %v674_v0  ;;  %514 = vmatprep.subr.mxu1 %v674_v0 }
  0x35   :  { %480 = vmatpush3.msra.mxu0 %v786_v15  ;;  %515 = vmatpush3.msra.mxu1 %v786_v15 }
  0x36   :  { %481 = vmatprep.subr.mxu0 %v674_v0  ;;  %516 = vmatprep.subr.mxu1 %v674_v0 }
  0x37   :  { %482 = vmatpush3.msra.mxu0 %v792_v16  ;;  %517 = vmatpush3.msra.mxu1 %v792_v16 }
  0x38   :  { %483 = vmatprep.subr.mxu0 %v674_v0  ;;  %518 = vmatprep.subr.mxu1 %v674_v0 }
  0x39   :  { %484 = vmatpush3.msra.mxu0 %v798_v18  ;;  %519 = vmatpush3.msra.mxu1 %v798_v18 }
  0x3a   :  { %485 = vmatprep.subr.mxu0 %v674_v0  ;;  %520 = vmatprep.subr.mxu1 %v674_v0 }
  0x3b   :  { %486 = vmatpush3.msra.mxu0 %v804_v19  ;;  %521 = vmatpush3.msra.mxu1 %v804_v19 }
  0x3c   :  { %488 = vmatmul.mubr.f32.vlgmr.msra.gmra.mxu0 %v63_v20  ;;  %523 = vmatmul.mubr.f32.vlgmr.msra.gmra.mxu1 %v62_v17 }
  0x3d   :  { %560 = vmatprep.subr.mxu1 %v674_v0  ;;  %525 = vmatprep.subr.mxu0 %v674_v0 }
  0x3e   :  { %561 = vmatpush3.msra.mxu1 %v714_v1  ;;  %526 = vmatpush3.msra.mxu0 %v714_v1 }
  0x3f   :  { %562 = vmatprep.subr.mxu1 %v674_v0  ;;  %527 = vmatprep.subr.mxu0 %v674_v0 }
  0x40   :  { %563 = vmatpush3.msra.mxu1 %v716_v2  ;;  %528 = vmatpush3.msra.mxu0 %v716_v2 }
  0x41   :  { %564 = vmatprep.subr.mxu1 %v674_v0  ;;  %529 = vmatprep.subr.mxu0 %v674_v0 }
  0x42   :  { %565 = vmatpush3.msra.mxu1 %v722_v3  ;;  %530 = vmatpush3.msra.mxu0 %v722_v3 }
  0x43   :  { %566 = vmatprep.subr.mxu1 %v674_v0  ;;  %531 = vmatprep.subr.mxu0 %v674_v0 }
  0x44   :  { %567 = vmatpush3.msra.mxu1 %v728_v4  ;;  %532 = vmatpush3.msra.mxu0 %v728_v4 }
  0x45   :  { %568 = vmatprep.subr.mxu1 %v674_v0  ;;  %533 = vmatprep.subr.mxu0 %v674_v0 }
  0x46   :  { %569 = vmatpush3.msra.mxu1 %v734_v5  ;;  %534 = vmatpush3.msra.mxu0 %v734_v5 }
  0x47   :  { %570 = vmatprep.subr.mxu1 %v674_v0  ;;  %535 = vmatprep.subr.mxu0 %v674_v0 }
  0x48   :  { %571 = vmatpush3.msra.mxu1 %v740_v6  ;;  %536 = vmatpush3.msra.mxu0 %v740_v6 }
  0x49   :  { %572 = vmatprep.subr.mxu1 %v674_v0  ;;  %537 = vmatprep.subr.mxu0 %v674_v0 }
  0x4a   :  { %573 = vmatpush3.msra.mxu1 %v746_v7  ;;  %538 = vmatpush3.msra.mxu0 %v746_v7 }
  0x4b   :  { %574 = vmatprep.subr.mxu1 %v674_v0  ;;  %539 = vmatprep.subr.mxu0 %v674_v0 }
  0x4c   :  { %575 = vmatpush3.msra.mxu1 %v752_v8  ;;  %540 = vmatpush3.msra.mxu0 %v752_v8 }
  0x4d   :  { %576 = vmatprep.subr.mxu1 %v674_v0  ;;  %541 = vmatprep.subr.mxu0 %v674_v0 }
  0x4e   :  { %577 = vmatpush3.msra.mxu1 %v758_v9  ;;  %542 = vmatpush3.msra.mxu0 %v758_v9 }
  0x4f   :  { %578 = vmatprep.subr.mxu1 %v674_v0  ;;  %543 = vmatprep.subr.mxu0 %v674_v0 }
  0x50   :  { %579 = vmatpush3.msra.mxu1 %v764_v10  ;;  %544 = vmatpush3.msra.mxu0 %v764_v10 }
  0x51   :  { %580 = vmatprep.subr.mxu1 %v674_v0  ;;  %545 = vmatprep.subr.mxu0 %v674_v0 }
  0x52   :  { %581 = vmatpush3.msra.mxu1 %v772_v12  ;;  %546 = vmatpush3.msra.mxu0 %v772_v12 }
  0x53   :  { %582 = vmatprep.subr.mxu1 %v674_v0  ;;  %547 = vmatprep.subr.mxu0 %v674_v0 }
  0x54   :  { %583 = vmatpush3.msra.mxu1 %v778_v13  ;;  %548 = vmatpush3.msra.mxu0 %v778_v13 }
  0x55   :  { %584 = vmatprep.subr.mxu1 %v674_v0  ;;  %549 = vmatprep.subr.mxu0 %v674_v0 }
  0x56   :  { %585 = vmatpush3.msra.mxu1 %v786_v15  ;;  %550 = vmatpush3.msra.mxu0 %v786_v15 }
  0x57   :  { %586 = vmatprep.subr.mxu1 %v674_v0  ;;  %551 = vmatprep.subr.mxu0 %v674_v0 }
  0x58   :  { %587 = vmatpush3.msra.mxu1 %v792_v16  ;;  %552 = vmatpush3.msra.mxu0 %v792_v16 }
  0x59   :  { %588 = vmatprep.subr.mxu1 %v674_v0  ;;  %553 = vmatprep.subr.mxu0 %v674_v0 }
  0x5a   :  { %589 = vmatpush3.msra.mxu1 %v798_v18  ;;  %554 = vmatpush3.msra.mxu0 %v798_v18 }
  0x5b   :  { %590 = vmatprep.subr.mxu1 %v674_v0  ;;  %592 = vmatprep.mubr.msk.f32.mxu1 %vm675_vm0, %v674_v0 }
  0x5c   :  { %591 = vmatpush3.msra.mxu1 %v804_v19  ;;  %555 = vmatprep.subr.mxu0 %v674_v0 }
  0x5d   :  { %556 = vmatpush3.msra.mxu0 %v804_v19  ;;  %557 = vmatprep.mubr.msk.f32.mxu0 %vm675_vm0, %v674_v0 }
  0xfc   :  { %v130_v21 = vpop.f32.mrf.mxu0  ;;  %v200_v22 = vpop.f32.mrf.mxu1 }
  0xfd   :  { %v201_v23 = vadd.f32 %v200_v22, %v130_v21 }
  0xfe   :  { %v489_v24 = vpop.f32.mrf.mxu0  ;;  %v524_v25 = vpop.f32.mrf.mxu1 }
  0xff   :  { %v204_v26 = vsub.f32 %v768_v11, %v201_v23 }
 0x101   :  { %v205_v27 = vmul.f32 %v204_v26, %v204_v26 }
 0x103   :  { %v206_v28 = vpack.c.bf16 %v205_v27, %v205_v27 }
 0x105   :  { %v207_v29 = vunpack.c.l.bf16 %v206_v28 }
 0x107   :  { %v208_v30 = vsub.f32 %v205_v27, %v207_v29  ;;  %593 = vmatmul.mubr.f32.vlgmr.msra.gmra.mxu1 %v207_v29 }
 0x109   :  { %558 = vmatmul.mubr.f32.vlgmr.msra.gmra.mxu0 %v208_v30 }
 0x1c7   :  { %v345_v31 = vpop.f32.mrf.mxu1 }
 0x1c9   :  { %v275_v32 = vpop.f32.mrf.mxu0  ;;  %v594_v33 = vpop.f32.mrf.mxu1 }
 0x1ca   :  { %v346_v34 = vadd.f32 %v345_v31, %v275_v32 }
 0x1cb   :  { %v559_v35 = vpop.f32.mrf.mxu0 }
 0x1cc   :  { %v349_v36 = vadd.f32 1e-10, %v346_v34 }
 0x1ce   :  { %602 = vrsqrt.f32 %v349_v36 }
 0x1db   :  { %v603_v37 = vpop.eup %602 }
 0x1dc   :  { %v353_v39 = vmul.f32 %v603_v37, %v204_v26 }
 0x1de   :  { %v360_v41 = vmul.f32 %v385_v38, %v353_v39 }
 0x1e0   :  { %v367_v42 = vadd.f32 %v386_v40, %v360_v41 }
 0x1e2   :  { %368 = vst [vmem:[#allocation7] sm:$0xff] %v367_v42 }
 0x1e3   :  { %655 = shalt.err (!%p652_p0)
}
 0x1e4   :  { %378 = dma.vmem_to_hbm [thread:$0]  %s376_s30, 128, %s895_s4, [#allocation4]  }
 0x1e5   :  { %668 = dma.done.wait [#allocation4], 128  }
 0x1e6   :  { %669 = vsyncadd [#allocation4], 4294967168 }
 0x1e7   :  { %382 = vsyncpa [#allocation3], 1 }
 0x1e8   :  { %383 = vsyncpa [#allocation6], 1 }
 0x1e9   :  { %384 = vsyncpa [#allocation4], 1 }

</bundles_post_ra>
